<compile_context>
chip_gen: v7x
topology: tpu7x:2x2x1
jax: 0.10.0
libtpu: 0.0.40
codegen_flags: <defaults>
</compile_context>

<pallas_src>
import functools

import jax
import jax.numpy as jnp
from jax.experimental import pallas as pl
from jax.experimental.pallas import tpu as pltpu

LANE = 128  # TPU lane width
SUBLANE = 8  # f32 sublane width


def qnetwork_kernel(x_ref, w1_ref, b1_ref, w2_ref, b2_ref, o_ref):
    # hidden = relu(x @ W1 + b1); matmul in bf16 on the MXU, f32 accumulate.
    x_bf = x_ref[...].astype(jnp.bfloat16)
    h = jnp.dot(x_bf, w1_ref[...], preferred_element_type=jnp.float32)
    h = jnp.maximum(h + b1_ref[...], 0.0)          # f32 bias + ReLU on the VPU

    # out = h @ W2 + b2; explicit bf16 cast for the MXU, f32 accumulate.
    y = jnp.dot(h.astype(jnp.bfloat16), w2_ref[...],
                preferred_element_type=jnp.float32)
    o_ref[...] = (y + b2_ref[...]).astype(o_ref.dtype)


def prepare_params(w1, b1, w2, b2):
    """Pad the output layer to a lane-dense (128-multiple) width and pre-cast
    the weights to bf16.  Call once; reuse the result across forward passes."""
    in_dim, hidden = w1.shape
    _, out_dim = w2.shape
    out_pad = max(LANE, pl.cdiv(out_dim, LANE) * LANE)

    w1p = w1.astype(jnp.bfloat16)                                  # (K, H) bf16
    b1p = b1.reshape(1, hidden).astype(jnp.float32)                # (1, H) f32
    w2p = jnp.zeros((hidden, out_pad), jnp.bfloat16)
    w2p = w2p.at[:, :out_dim].set(w2.astype(jnp.bfloat16))         # (H, Opad) bf16
    b2p = jnp.zeros((1, out_pad), jnp.float32)
    b2p = b2p.at[:, :out_dim].set(b2.reshape(1, out_dim))          # (1, Opad) f32
    return (w1p, b1p, w2p, b2p), out_dim


@functools.partial(jax.jit, static_argnames=("out_dim", "block_b"))
def qnetwork_forward(x, params, out_dim, block_b=512):
    """x: (B, input_dim) f32; params from prepare_params.
    Returns (B, out_dim) f32."""
    w1, b1, w2, b2 = params
    B, K = x.shape
    H = w1.shape[1]
    O_pad = w2.shape[1]

    # Batch tile: multiple of the f32 sublane width, capped at block_b.
    b_rounded = pl.cdiv(B, SUBLANE) * SUBLANE
    TB = min(block_b, b_rounded)
    B_pad = pl.cdiv(B, TB) * TB
    if B_pad != B:
        x = jnp.pad(x, ((0, B_pad - B), (0, 0)))

    grid = (B_pad // TB,)

    out = pl.pallas_call(
        qnetwork_kernel,
        out_shape=jax.ShapeDtypeStruct((B_pad, O_pad), jnp.float32),
        grid=grid,
        in_specs=[
            pl.BlockSpec((TB, K), lambda i: (i, 0)),      # x: tiled over batch
            pl.BlockSpec((K, H), lambda i: (0, 0)),       # W1: resident
            pl.BlockSpec((1, H), lambda i: (0, 0)),       # b1: resident
            pl.BlockSpec((H, O_pad), lambda i: (0, 0)),   # W2: resident
            pl.BlockSpec((1, O_pad), lambda i: (0, 0)),   # b2: resident
        ],
        out_specs=pl.BlockSpec((TB, O_pad), lambda i: (i, 0)),
        compiler_params=pltpu.CompilerParams(
            dimension_semantics=("parallel",)),           # 2 TCs on v7x
    )(x, w1, b1, w2, b2)

    # Strip batch padding and the lane-padding of the output layer.
    return out[:B, :out_dim]


def init_params(key, input_dim, output_dim, hidden_dim=256):
    """Deterministic init mirroring nn.Linear shapes (stored transposed:
    W has shape (in_features, out_features) so y = x @ W + b)."""
    k1, k2, k3, k4 = jax.random.split(key, 4)
    lim1 = 1.0 / jnp.sqrt(jnp.float32(input_dim))
    lim2 = 1.0 / jnp.sqrt(jnp.float32(hidden_dim))
    w1 = jax.random.uniform(k1, (input_dim, hidden_dim), jnp.float32, -lim1, lim1)
    b1 = jax.random.uniform(k2, (1, hidden_dim), jnp.float32, -lim1, lim1)
    w2 = jax.random.uniform(k3, (hidden_dim, output_dim), jnp.float32, -lim2, lim2)
    b2 = jax.random.uniform(k4, (1, output_dim), jnp.float32, -lim2, lim2)
    return w1, b1, w2, b2


if __name__ == "__main__":
    key = jax.random.PRNGKey(0)
    batch, input_dim, output_dim, hidden_dim = 8, 16, 4, 256

    kx, kp = jax.random.split(key)
    x = jax.random.normal(kx, (batch, input_dim), jnp.float32)
    w1, b1, w2, b2 = init_params(kp, input_dim, output_dim, hidden_dim)

    params, out_dim = prepare_params(w1, b1, w2, b2)
    out = qnetwork_forward(x, params, out_dim)
    out = jax.block_until_ready(out)

    # Reference with the same bf16-MXU / f32-accumulate math as the kernel.
    h_ref = jnp.maximum(
        jnp.dot(x.astype(jnp.bfloat16), w1.astype(jnp.bfloat16),
                preferred_element_type=jnp.float32) + b1, 0.0)
    ref = jnp.dot(h_ref.astype(jnp.bfloat16), w2.astype(jnp.bfloat16),
                  preferred_element_type=jnp.float32) + b2

    # Full-f32 reference to confirm bf16 precision is adequate for the Q-head.
    ref_f32 = jnp.maximum(x @ w1 + b1, 0.0) @ w2 + b2

    assert out.shape == (batch, output_dim)
    assert jnp.allclose(out, ref, atol=1e-2, rtol=1e-2)
    assert jnp.allclose(out, ref_f32, atol=5e-2, rtol=5e-2)

    print("KERNEL_OK")
</pallas_src>

<mosaic_0001>
module attributes {stable_mosaic.version = 11 : i64} {
  func.func @qnetwork_kernel(%arg0: i32, %arg1: memref<8x16xf32, #tpu.memory_space<vmem>>, %arg2: memref<16x256xbf16, #tpu.memory_space<vmem>>, %arg3: memref<1x256xf32, #tpu.memory_space<vmem>>, %arg4: memref<256x128xbf16, #tpu.memory_space<vmem>>, %arg5: memref<1x128xf32, #tpu.memory_space<vmem>>, %arg6: memref<8x128xf32, #tpu.memory_space<vmem>>) attributes {dimension_semantics = [#tpu.dimension_semantics<parallel>], iteration_bounds = array<i64: 1>, scalar_prefetch = 0 : i64, scratch_operands = 0 : i64, tpu.core_type = #tpu.core_type<tc>, window_params = [{transform_indices = @transform_0, window_bounds = array<i64: 8, 16>}, {pipeline_mode = #tpu.pipeline_mode<synchronous>, transform_indices = @transform_1, window_bounds = array<i64: 16, 256>}, {pipeline_mode = #tpu.pipeline_mode<synchronous>, transform_indices = @transform_2, window_bounds = array<i64: 1, 256>}, {pipeline_mode = #tpu.pipeline_mode<synchronous>, transform_indices = @transform_3, window_bounds = array<i64: 256, 128>}, {pipeline_mode = #tpu.pipeline_mode<synchronous>, transform_indices = @transform_4, window_bounds = array<i64: 1, 128>}, {transform_indices = @transform_5, window_bounds = array<i64: 8, 128>}]} {
    %c0 = arith.constant 0 : index
    %c0_0 = arith.constant 0 : index
    %0 = vector.load %arg1[%c0, %c0_0] : memref<8x16xf32, #tpu.memory_space<vmem>>, vector<8x16xf32>
    %1 = arith.truncf %0 : vector<8x16xf32> to vector<8x16xbf16>
    %c0_1 = arith.constant 0 : index
    %c0_2 = arith.constant 0 : index
    %2 = vector.load %arg2[%c0_1, %c0_2] : memref<16x256xbf16, #tpu.memory_space<vmem>>, vector<16x256xbf16>
    %cst = arith.constant dense<0.000000e+00> : vector<8x256xf32>
    %3 = tpu.matmul %1, %2, %cst {dimension_numbers = #tpu.dot_dimension_numbers<[1], [0], [0], [1], [0, 0, 1, 1], [], []>} : vector<8x16xbf16>, vector<16x256xbf16>, vector<8x256xf32> -> vector<8x256xf32>
    %c0_3 = arith.constant 0 : index
    %c0_4 = arith.constant 0 : index
    %4 = vector.load %arg3[%c0_3, %c0_4] : memref<1x256xf32, #tpu.memory_space<vmem>>, vector<1x256xf32>
    %5 = vector.broadcast %4 : vector<1x256xf32> to vector<8x256xf32>
    %6 = arith.addf %3, %5 : vector<8x256xf32>
    %cst_5 = arith.constant 0.000000e+00 : f32
    %7 = vector.broadcast %cst_5 : f32 to vector<8x256xf32>
    %8 = arith.maximumf %6, %7 : vector<8x256xf32>
    %9 = arith.truncf %8 : vector<8x256xf32> to vector<8x256xbf16>
    %c0_6 = arith.constant 0 : index
    %c0_7 = arith.constant 0 : index
    %10 = vector.load %arg4[%c0_6, %c0_7] : memref<256x128xbf16, #tpu.memory_space<vmem>>, vector<256x128xbf16>
    %cst_8 = arith.constant dense<0.000000e+00> : vector<8x128xf32>
    %11 = tpu.matmul %9, %10, %cst_8 {dimension_numbers = #tpu.dot_dimension_numbers<[1], [0], [0], [1], [0, 0, 1, 1], [], []>} : vector<8x256xbf16>, vector<256x128xbf16>, vector<8x128xf32> -> vector<8x128xf32>
    %c0_9 = arith.constant 0 : index
    %c0_10 = arith.constant 0 : index
    %12 = vector.load %arg5[%c0_9, %c0_10] : memref<1x128xf32, #tpu.memory_space<vmem>>, vector<1x128xf32>
    %13 = vector.broadcast %12 : vector<1x128xf32> to vector<8x128xf32>
    %14 = arith.addf %11, %13 : vector<8x128xf32>
    %c0_11 = arith.constant 0 : index
    %c0_12 = arith.constant 0 : index
    %15 = vector.load %arg6[%c0_11, %c0_12] : memref<8x128xf32, #tpu.memory_space<vmem>>, vector<8x128xf32>
    tpu.vector_store %arg6[%c0_11, %c0_12], %14 {strides = array<i32>} : memref<8x128xf32, #tpu.memory_space<vmem>>, vector<8x128xf32>,
    return
  }
  func.func @transform_0(%arg0: i32) -> (i32, i32) {
    %c0_i32 = arith.constant 0 : i32
    %c0_i32_0 = arith.constant 0 : i32
    return %arg0, %c0_i32 : i32, i32
  }
  func.func @transform_1(%arg0: i32) -> (i32, i32) {
    %c0_i32 = arith.constant 0 : i32
    %c0_i32_0 = arith.constant 0 : i32
    %c0_i32_1 = arith.constant 0 : i32
    return %c0_i32, %c0_i32_0 : i32, i32
  }
  func.func @transform_2(%arg0: i32) -> (i32, i32) {
    %c0_i32 = arith.constant 0 : i32
    %c0_i32_0 = arith.constant 0 : i32
    %c0_i32_1 = arith.constant 0 : i32
    return %c0_i32, %c0_i32_0 : i32, i32
  }
  func.func @transform_3(%arg0: i32) -> (i32, i32) {
    %c0_i32 = arith.constant 0 : i32
    %c0_i32_0 = arith.constant 0 : i32
    %c0_i32_1 = arith.constant 0 : i32
    return %c0_i32, %c0_i32_0 : i32, i32
  }
  func.func @transform_4(%arg0: i32) -> (i32, i32) {
    %c0_i32 = arith.constant 0 : i32
    %c0_i32_0 = arith.constant 0 : i32
    %c0_i32_1 = arith.constant 0 : i32
    return %c0_i32, %c0_i32_0 : i32, i32
  }
  func.func @transform_5(%arg0: i32) -> (i32, i32) {
    %c0_i32 = arith.constant 0 : i32
    %c0_i32_0 = arith.constant 0 : i32
    return %arg0, %c0_i32 : i32, i32
  }
}

</mosaic_0001>

<bundles_post_ra>
// kernel: qnetwork_forward.1
= control target key start
LH: loop header
LB: loop body
LE: loop exit
PB: predicated region body
PF: predicated region fallthrough
CT: control target
= control target key end

     0   :  { %10 = vsyncpa [#allocation3], 0  ;;  %s539_s0 = inlined_call_operand.hbm [shape: f32[8,16], index: 0, kind: input, shape index: {}]   ;;  %s540_s1 = inlined_call_operand.hbm [shape: bf16[16,256], index: 1, kind: input, shape index: {}]   ;;  %s541_s2 = inlined_call_operand.vmem [shape: f32[1,256], index: 2, kind: input, shape index: {}]   ;;  %s542_s3 = inlined_call_operand.hbm [shape: bf16[256,128], index: 3, kind: input, shape index: {}]   ;;  %s543_s4 = inlined_call_operand.vmem [shape: f32[1,128], index: 4, kind: input, shape index: {}]   ;;  %s544_s5 = inlined_call_operand.vmem [shape: f32[8,128], index: 5, kind: output, shape index: {}]  }
   0x1   :  { %11 = vsyncpa [#allocation5], 0  ;;  %s456_s18 = smov [#allocation4]   ;;  %s386_s22 = scalar_lea.hbm %s540_s1, 256 }
   0x2   :  { %s27_s19 = sshll.u32 %s456_s18, 4  ;;  %p387_p0 = scmp.ne.s32.totalorder %s540_s1, %s386_s22  ;;  %s28_s19 = int_to_ptr.vmem [resolvable:$true] %s27_s19 }
   0x3   :  { %p390_p1 = scmp.lt.u32.totalorder %s386_s22, %s540_s1 }
   0x5   :  { %p392_p2 = pnand %p390_p1, %p387_p0 }
   0x7   :  { %395 = shalt.err (!%p392_p2)
}
   0x8   :  { %s396_s27 = scalar_lea.vmem %s28_s19, 256  ;;  %p401_p4 = scmp.lt.s32.totalorder %s28_s19, %s28_s19 }
   0x9   :  { %p397_p3 = scmp.ne.s32.totalorder %s28_s19, %s396_s27  ;;  %p402_p5 = scmp.lt.s32.totalorder %s396_s27, %s396_s27 }
   0xb   :  { %p403_p6 = por %p402_p5, %p401_p4 }
   0xd   :  { %p404_p7 = pnand %p403_p6, %p397_p3 }
   0xf   :  { %407 = shalt.err (!%p404_p7)
}
  0x10   :  { %s457_s28 = smov 128   ;;  %s458_s29 = smov 8  }
  0x11   :  { %33 = dma.hbm_to_vmem [thread:$0]  %s540_s1, 256, %s28_s19, [#allocation5], %s457_s28, %s457_s28, %s458_s29  }
  0x12   :  { %s459_s7 = smov [#allocation2]   ;;  %s460_s9 = smov [#allocation6]  }
  0x13   :  { %s18_s8 = sshll.u32 %s459_s7, 4  ;;  %s41_s10 = sshll.u32 %s460_s9, 4  ;;  %s19_s8 = int_to_ptr.vmem [resolvable:$true] %s18_s8  ;;  %s42_s10 = int_to_ptr.vmem [resolvable:$true] %s41_s10 }
  0x14   :  { %s408_s13 = scalar_lea.hbm %s539_s0, 128 }
  0x15   :  { %p409_p8 = scmp.ne.s32.totalorder %s539_s0, %s408_s13  ;;  %p412_p9 = scmp.lt.u32.totalorder %s408_s13, %s539_s0 }
  0x17   :  { %p414_p10 = pnand %p412_p9, %p409_p8 }
  0x19   :  { %417 = shalt.err (!%p414_p10)
}
  0x1a   :  { %s418_s1 = scalar_lea.vmem %s19_s8, 128  ;;  %p423_p12 = scmp.lt.s32.totalorder %s19_s8, %s19_s8 }
  0x1b   :  { %p419_p11 = scmp.ne.s32.totalorder %s19_s8, %s418_s1  ;;  %p424_p13 = scmp.lt.s32.totalorder %s418_s1, %s418_s1 }
  0x1d   :  { %p425_p0 = por %p424_p13, %p423_p12 }
  0x1f   :  { %p426_p1 = pnand %p425_p0, %p419_p11 }
  0x21   :  { %429 = shalt.err (!%p426_p1)
}
  0x22   :  { %21 = dma.hbm_to_vmem [thread:$0]  %s539_s0, 128, %s19_s8, [#allocation3]  }
  0x23   :  { %s430_s22 = scalar_lea.hbm %s542_s3, 2048 }
  0x24   :  { %p431_p2 = scmp.ne.s32.totalorder %s542_s3, %s430_s22  ;;  %p434_p3 = scmp.lt.u32.totalorder %s430_s22, %s542_s3 }
  0x26   :  { %p436_p4 = pnand %p434_p3, %p431_p2 }
  0x28   :  { %439 = shalt.err (!%p436_p4)
}
  0x29   :  { %s440_s27 = scalar_lea.vmem %s42_s10, 2048  ;;  %p445_p6 = scmp.lt.s32.totalorder %s42_s10, %s42_s10 }
  0x2a   :  { %p441_p5 = scmp.ne.s32.totalorder %s42_s10, %s440_s27  ;;  %p446_p7 = scmp.lt.s32.totalorder %s440_s27, %s440_s27 }
  0x2c   :  { %p447_p8 = por %p446_p7, %p445_p6 }
  0x2e   :  { %p448_p9 = pnand %p447_p8, %p441_p5 }
  0x30   :  { %451 = shalt.err (!%p448_p9)
}
  0x31   :  { %s461_s0 = smov 64   ;;  %s462_s28 = smov 4  }
  0x32   :  { %47 = dma.hbm_to_vmem [thread:$0]  %s542_s3, 2048, %s42_s10, [#allocation5], %s461_s0, %s461_s0, %s462_s28  }
  0x33   :  { %452 = dma.done.wait [#allocation3], 128  }
  0x34   :  { %453 = vsyncadd [#allocation3], 4294967168 }
  0x35   :  { %454 = dma.done.wait [#allocation5], 2304  }
  0x36   :  { %455 = vsyncadd [#allocation5], 4294964992  ;;  %v463_v0 = vmov 0   ;;  %v367_v1 = vld [vmem:[#allocation4 + $0x4] ss:$8 sps:$4 sm:$0xff]   ;;  %v60_v3 = vld [vmem:[#allocation2] sm:$0xff]  ;;  %v66_v21 = vlaneseq }
  0x37   :  { %122 = vmatprep.mubr.bf16.mxu0 %v463_v0  ;;  %v369_v2 = vld [vmem:[#allocation4] ss:$8 sps:$4 sm:$0xff]   ;;  %90 = vmatprep.subr.bf16.mxu0 %v367_v1  ;;  %v61_v4 = vpack.c.bf16 %v60_v3, %v60_v3  ;;  %v370_v5 = vld [vmem:[#allocation6 + $0x40] sm:$0xff]   ;;  %vm86_vm0 = vcmask 130048   ;;  %v372_v7 = vld [vmem:[#allocation6 + $0x48] sm:$0xff]  }
  0x38   :  { %91 = vmatpush1.bf16.msra.mxu0 %v369_v2  ;;  %v371_v6 = vld [vmem:[#allocation6] sm:$0xff]   ;;  %337 = vmatprep.subr.bf16.mxu1 %v370_v5  ;;  %v373_v8 = vld [vmem:[#allocation6 + $0x8] sm:$0xff]   ;;  %v374_v9 = vld [vmem:[#allocation6 + $0x50] sm:$0xff]   ;;  %v67_v22 = vshrl.u32 %v66_v21, 7 }
  0x39   :  { %338 = vmatpush3.bf16.msra.mxu1 %v371_v6  ;;  %v375_v10 = vld [vmem:[#allocation6 + $0x10] sm:$0xff]   ;;  %v376_v11 = vld [vmem:[#allocation6 + $0x58] sm:$0xff]   ;;  %v378_v13 = vld [vmem:[#allocation6 + $0x60] sm:$0xff]  }
  0x3a   :  { %339 = vmatprep.subr.bf16.mxu1 %v372_v7  ;;  %v377_v12 = vld [vmem:[#allocation6 + $0x18] sm:$0xff]   ;;  %v379_v14 = vld [vmem:[#allocation6 + $0x20] sm:$0xff]   ;;  %v380_v15 = vld [vmem:[#allocation6 + $0x68] sm:$0xff]   ;;  %v68_v23 = vsub.s32 0, %v67_v22  ;;  %v72_v25 = vsub.s32 1, %v67_v22 }
  0x3b   :  { %319 = vmatmul.mubr.msk.bf16.vlgmr.msra.gmra.mrb[0].mxu0 %vm86_vm0, %v61_v4  ;;  %v381_v16 = vld [vmem:[#allocation6 + $0x28] sm:$0xff]   ;;  %v382_v17 = vld [vmem:[#allocation6 + $0x70] sm:$0xff]   ;;  %v384_v19 = vld [vmem:[#allocation6 + $0x78] sm:$0xff]  }
  0x3c   :  { %v383_v18 = vld [vmem:[#allocation6 + $0x30] sm:$0xff]   ;;  %v385_v20 = vld [vmem:[#allocation6 + $0x38] sm:$0xff]   ;;  %v64_v24 = vld [vmem:[%s541_s2] sm:$0x3] }
  0x3d   :  { %340 = vmatpush3.bf16.msra.mxu1 %v373_v8  ;;  %v69_v26 = vrot.slane %v64_v24, %v68_v23  ;;  %v73_v27 = vrot.slane %v64_v24, %v72_v25  ;;  %v320_v39 = vld [vmem:[%s543_s4] ss:$0 sm:$0xff] }
  0x3e   :  { %341 = vmatprep.subr.bf16.mxu1 %v374_v9 }
  0x41   :  { %342 = vmatpush3.bf16.msra.mxu1 %v375_v10 }
  0x42   :  { %343 = vmatprep.subr.bf16.mxu1 %v376_v11 }
  0x45   :  { %344 = vmatpush3.bf16.msra.mxu1 %v377_v12 }
  0x46   :  { %345 = vmatprep.subr.bf16.mxu1 %v378_v13 }
  0x49   :  { %346 = vmatpush3.bf16.msra.mxu1 %v379_v14 }
  0x4a   :  { %347 = vmatprep.subr.bf16.mxu1 %v380_v15 }
  0x4d   :  { %348 = vmatpush3.bf16.msra.mxu1 %v381_v16 }
  0x4e   :  { %349 = vmatprep.subr.bf16.mxu1 %v382_v17 }
  0x51   :  { %350 = vmatpush3.bf16.msra.mxu1 %v383_v18 }
  0x52   :  { %351 = vmatprep.subr.bf16.mxu1 %v384_v19 }
  0x55   :  { %352 = vmatpush3.bf16.msra.mxu1 %v385_v20 }
 0x10e   :  { %v124_v28 = vpop.f32.mrb[0].mxu0 }
 0x10f   :  { %v125_v29 = vadd.f32 %v124_v28, %v69_v26  ;;  %v126_v30 = vpop.f32.mrb[1].mxu0 }
 0x110   :  { %v127_v31 = vadd.f32 %v126_v30, %v73_v27  ;;  %v128_v32 = vpop.f32.mrb[2].mxu0 }
 0x111   :  { %v131_v33 = vmax.f32 %v125_v29, 0.0  ;;  %v129_v34 = vpop.f32.mrb[3].mxu0 }
 0x112   :  { %v132_v35 = vmax.f32 %v127_v31, 0.0 }
 0x113   :  { %v133_v37 = vpack.c.bf16 %v131_v33, %v131_v33 }
 0x114   :  { %v134_v36 = vpack.c.bf16 %v132_v35, %v132_v35 }
 0x116   :  { %302 = vmatprep.mubr.bf16.mxu1 %v134_v36 }
 0x117   :  { %303 = vmatmul.mubr.bf16.vlgmr.msra.gmra.mrb[0].mxu1 %v133_v37 }
 0x1ea   :  { %v353_v38 = vpop.f32.mrb[0].mxu1 }
 0x1eb   :  { %v354_v40 = vpop.f32.mrb[1].mxu1 }
 0x1ec   :  { %v355_v41 = vadd.f32 %v354_v40, %v353_v38  ;;  %v356_v42 = vpop.f32.mrb[2].mxu1 }
 0x1ed   :  { %v357_v43 = vpop.f32.mrb[3].mxu1 }
 0x1ee   :  { %v305_v44 = vadd.f32 %v355_v41, %v320_v39 }
 0x1f0   :  { %310 = vst [vmem:[%s544_s5] sm:$0xff] %v305_v44 }
 0x1f1   :  { %315 = vsyncpa [#allocation3], 1 }
 0x1f2   :  { %316 = vsyncpa [#allocation5], 1 }

</bundles_post_ra>
